<compile_context>
chip_gen: v7x
topology: tpu7x:2x2x1
jax: 0.10.0
libtpu: 0.0.40
codegen_flags: <defaults>
</compile_context>

<pallas_src>
import functools

import jax
import jax.numpy as jnp
from jax import lax
from jax.experimental import pallas as pl
from jax.experimental.pallas import tpu as pltpu

LANES = 128
MAX_ROW_TILE = 8192        # 8192 * 128 * 4B = 4 MiB per f32 input block
_LOG2 = 0.6931471805599453
_MIB = 1024 * 1024


def _round_up(x, m):
    return (x + m - 1) // m * m


def _num_shards_for_device():
    """2 on dual-TensorCore parts (megacore / v7x), else 1."""
    try:
        kind = jax.devices()[0].device_kind.lower()
    except Exception:
        return 1
    if any(tag in kind for tag in ("v3", "v4", "v5p", "v7")):
        return 2
    return 1


def _logcosh_kernel(pred_ref, true_ref, o_ref, acc_ref, *,
                    rows, row_tile, blocks_per_shard, acc_rows,
                    edge_start, needs_mask):
    s = pl.program_id(0)          # shard (parallel) axis
    j = pl.program_id(1)          # reduction axis within shard
    blk = s * blocks_per_shard + j

    @pl.when(j == 0)
    def _():
        acc_ref[...] = jnp.zeros_like(acc_ref)

    d = pred_ref[...].astype(jnp.float32) - true_ref[...].astype(jnp.float32)
    ad = jnp.abs(d)
    # Numerically stable log(cosh(x)) = |x| + log1p(exp(-2|x|)) - log(2).
    lc = ad + jnp.log1p(jnp.exp(-2.0 * ad)) - jnp.float32(_LOG2)

    def accumulate(x):
        # Reduce only down to (acc_rows, 128): acc_rows/8 independent vreg-add
        # chains per step; the single cross-lane reduce happens in the wrapper.
        acc_ref[...] += jnp.sum(
            x.reshape(row_tile // acc_rows, acc_rows, LANES), axis=0)

    if needs_mask:
        is_edge = blk >= edge_start

        @pl.when(jnp.logical_not(is_edge))
        def _():
            accumulate(lc)

        @pl.when(is_edge)
        def _():
            # Row-index mask only: the <=127 lane-pad elements were zero-padded
            # and logcosh(0) == 0 exactly, so only out-of-range rows (ragged
            # last block / clamped ghost blocks) need zeroing.
            valid_rows = rows - blk * row_tile
            row_ids = lax.broadcasted_iota(jnp.int32, (row_tile, LANES), 0)
            accumulate(jnp.where(row_ids < valid_rows, lc, 0.0))
    else:
        accumulate(lc)

    @pl.when(j == blocks_per_shard - 1)
    def _():
        o_ref[...] = acc_ref[...]


def logcosh_loss(y_pred, y_true):
    """mean(log(cosh(y_pred - y_true))) — matches torch LogCoshLoss.forward."""
    assert y_pred.shape == y_true.shape
    n_total = y_pred.size
    if n_total == 0:
        return jnp.float32(jnp.nan)   # torch.mean over an empty tensor is NaN

    dtype = jnp.result_type(y_pred.dtype, y_true.dtype)
    p = jnp.ravel(y_pred).astype(dtype)
    t = jnp.ravel(y_true).astype(dtype)

    # Pad only up to the next multiple of 128 lanes (<= 127 elems) so the flat
    # vector can be viewed as a lane-dense [rows, 128] slab. No block-size pad.
    rem = n_total % LANES
    if rem:
        p = jnp.pad(p, (0, LANES - rem))
        t = jnp.pad(t, (0, LANES - rem))
    rows = p.size // LANES
    p2 = p.reshape(rows, LANES)
    t2 = t.reshape(rows, LANES)

    itemsize = jnp.dtype(dtype).itemsize
    # Minimum sublane packing: 8 rows (f32), 16 (bf16/f16), 32 (8-bit).
    pack = max(8, 32 // max(1, itemsize))
    row_tile = min(MAX_ROW_TILE, _round_up(rows, pack))
    num_blocks = pl.cdiv(rows, row_tile)

    num_shards = _num_shards_for_device()
    if num_blocks < num_shards:
        num_shards = 1
    blocks_per_shard = pl.cdiv(num_blocks, num_shards)

    # Edge handling (static): only the ragged last real block and the clamped
    # ghost blocks ever take the masked path.
    ragged_last = (rows % row_tile) != 0
    edge_start = (num_blocks - 1) if ragged_last else num_blocks
    needs_mask = edge_start < num_shards * blocks_per_shard

    # Widest (8,128)-aligned accumulator slab that divides the row tile.
    acc_rows = next(r for r in (64, 32, 16, 8) if row_tile % r == 0)

    def in_map(s, j):
        # Clamp ghost blocks (shard-count padding) into range; the row mask
        # inside the kernel zeroes their contribution.
        return (jnp.minimum(s * blocks_per_shard + j, num_blocks - 1), 0)

    kernel = functools.partial(
        _logcosh_kernel,
        rows=rows,
        row_tile=row_tile,
        blocks_per_shard=blocks_per_shard,
        acc_rows=acc_rows,
        edge_start=edge_start,
        needs_mask=needs_mask,
    )

    # 2 inputs x 2 pipeline buffers + headroom for edge-path temporaries.
    block_bytes = row_tile * LANES * itemsize
    vmem_limit = int(min(60 * _MIB, max(32 * _MIB, 4 * block_bytes + 24 * _MIB)))

    partials = pl.pallas_call(
        kernel,
        out_shape=jax.ShapeDtypeStruct((num_shards * acc_rows, LANES),
                                       jnp.float32),
        grid_spec=pltpu.PrefetchScalarGridSpec(
            num_scalar_prefetch=0,
            grid=(num_shards, blocks_per_shard),
            in_specs=[
                pl.BlockSpec((row_tile, LANES), in_map),
                pl.BlockSpec((row_tile, LANES), in_map),
            ],
            out_specs=pl.BlockSpec((acc_rows, LANES), lambda s, j: (s, 0)),
            scratch_shapes=[pltpu.VMEM((acc_rows, LANES), jnp.float32)],
        ),
        compiler_params=pltpu.CompilerParams(
            dimension_semantics=("parallel", "arbitrary"),
            vmem_limit_bytes=vmem_limit,
        ),
        cost_estimate=pl.CostEstimate(
            flops=6 * n_total,
            transcendentals=2 * n_total,
            bytes_accessed=2 * n_total * itemsize
            + 4 * num_shards * acc_rows * LANES,
        ),
    )(p2, t2)

    return jnp.sum(partials) / jnp.float32(n_total)


if __name__ == "__main__":
    key = jax.random.PRNGKey(0)
    k1, k2, k3, k4, k5, k6 = jax.random.split(key, 6)

    # Primary test: small shapes consistent with a regression-loss use case.
    y_pred = jax.random.normal(k1, (2, 4, 16, 16), dtype=jnp.float32)
    y_true = jax.random.normal(k2, (2, 4, 16, 16), dtype=jnp.float32)
    loss = logcosh_loss(y_pred, y_true)
    jax.block_until_ready(loss)
    ref = jnp.mean(jnp.log(jnp.cosh(y_pred - y_true)))
    assert jnp.allclose(loss, ref, rtol=1e-5, atol=1e-6), (loss, ref)

    # Ragged size: lane padding + partial row block + in-kernel row mask.
    yp2 = jax.random.normal(k3, (3, 5, 11), dtype=jnp.float32)
    yt2 = jax.random.normal(k4, (3, 5, 11), dtype=jnp.float32)
    loss2 = logcosh_loss(yp2, yt2)
    jax.block_until_ready(loss2)
    ref2 = jnp.mean(jnp.log(jnp.cosh(yp2 - yt2)))
    assert jnp.allclose(loss2, ref2, rtol=1e-5, atol=1e-6), (loss2, ref2)

    # Larger size: multi-block reduction axis, ragged last block, and (on
    # dual-TC parts) the 2-shard parallel axis with a clamped ghost block.
    yp3 = jax.random.normal(k5, (2, 8200, 128), dtype=jnp.float32)
    yt3 = jax.random.normal(k6, (2, 8200, 128), dtype=jnp.float32)
    loss3 = logcosh_loss(yp3, yt3)
    jax.block_until_ready(loss3)
    ref3 = jnp.mean(jnp.log(jnp.cosh(yp3 - yt3)))
    assert jnp.allclose(loss3, ref3, rtol=5e-5, atol=1e-6), (loss3, ref3)

    print("KERNEL_OK")
</pallas_src>

<mosaic_0001>
module attributes {stable_mosaic.version = 11 : i64} {
  func.func @_logcosh_kernel(%arg0: i32, %arg1: i32, %arg2: memref<16x128xf32, #tpu.memory_space<vmem>>, %arg3: memref<16x128xf32, #tpu.memory_space<vmem>>, %arg4: memref<16x128xf32, #tpu.memory_space<vmem>>, %arg5: memref<16x128xf32, #tpu.memory_space<vmem>>) attributes {dimension_semantics = [#tpu.dimension_semantics<parallel>, #tpu.dimension_semantics<arbitrary>], iteration_bounds = array<i64: 1, 1>, scalar_prefetch = 0 : i64, scratch_operands = 1 : i64, tpu.core_type = #tpu.core_type<tc>, window_params = [{transform_indices = @transform_0, window_bounds = array<i64: 16, 128>}, {transform_indices = @transform_1, window_bounds = array<i64: 16, 128>}, {transform_indices = @transform_2, window_bounds = array<i64: 16, 128>}]} {
    %c0_i32 = arith.constant 0 : i32
    %0 = arith.cmpi eq, %arg1, %c0_i32 : i32
    %1 = arith.extui %0 : i1 to i32
    %c0_i32_0 = arith.constant 0 : i32
    %2 = arith.cmpi ne, %1, %c0_i32_0 : i32
    scf.if %2 {
      %cst_12 = arith.constant 0.000000e+00 : f32
      %22 = vector.broadcast %cst_12 : f32 to vector<16x128xf32>
      %c0_13 = arith.constant 0 : index
      %c0_14 = arith.constant 0 : index
      %23 = vector.load %arg5[%c0_13, %c0_14] : memref<16x128xf32, #tpu.memory_space<vmem>>, vector<16x128xf32>
      tpu.vector_store %arg5[%c0_13, %c0_14], %22 {strides = array<i32>} : memref<16x128xf32, #tpu.memory_space<vmem>>, vector<16x128xf32>,
    } else {
    }
    %c0 = arith.constant 0 : index
    %c0_1 = arith.constant 0 : index
    %3 = vector.load %arg2[%c0, %c0_1] : memref<16x128xf32, #tpu.memory_space<vmem>>, vector<16x128xf32>
    %c0_2 = arith.constant 0 : index
    %c0_3 = arith.constant 0 : index
    %4 = vector.load %arg3[%c0_2, %c0_3] : memref<16x128xf32, #tpu.memory_space<vmem>>, vector<16x128xf32>
    %5 = arith.subf %3, %4 : vector<16x128xf32>
    %6 = math.absf %5 : vector<16x128xf32>
    %cst = arith.constant -2.000000e+00 : f32
    %7 = vector.broadcast %cst : f32 to vector<16x128xf32>
    %8 = arith.mulf %7, %6 : vector<16x128xf32>
    %9 = math.exp %8 : vector<16x128xf32>
    %10 = math.log1p %9 : vector<16x128xf32>
    %11 = arith.addf %6, %10 : vector<16x128xf32>
    %cst_4 = arith.constant 0.693147182 : f32
    %12 = vector.broadcast %cst_4 : f32 to vector<16x128xf32>
    %13 = arith.subf %11, %12 : vector<16x128xf32>
    %c0_5 = arith.constant 0 : index
    %c0_6 = arith.constant 0 : index
    %14 = vector.load %arg5[%c0_5, %c0_6] : memref<16x128xf32, #tpu.memory_space<vmem>>, vector<16x128xf32>
    %15 = vector.shape_cast %13 : vector<16x128xf32> to vector<1x16x128xf32>
    %cst_7 = arith.constant dense<0.000000e+00> : vector<16x128xf32>
    %16 = vector.multi_reduction <add>, %15, %cst_7 [0] : vector<1x16x128xf32> to vector<16x128xf32>
    %17 = arith.addf %14, %16 : vector<16x128xf32>
    %c0_8 = arith.constant 0 : index
    %c0_9 = arith.constant 0 : index
    %18 = vector.load %arg5[%c0_8, %c0_9] : memref<16x128xf32, #tpu.memory_space<vmem>>, vector<16x128xf32>
    tpu.vector_store %arg5[%c0_8, %c0_9], %17 {strides = array<i32>} : memref<16x128xf32, #tpu.memory_space<vmem>>, vector<16x128xf32>,
    %c0_i32_10 = arith.constant 0 : i32
    %19 = arith.cmpi eq, %arg1, %c0_i32_10 : i32
    %20 = arith.extui %19 : i1 to i32
    %c0_i32_11 = arith.constant 0 : i32
    %21 = arith.cmpi ne, %20, %c0_i32_11 : i32
    scf.if %21 {
      %c0_12 = arith.constant 0 : index
      %c0_13 = arith.constant 0 : index
      %22 = vector.load %arg5[%c0_12, %c0_13] : memref<16x128xf32, #tpu.memory_space<vmem>>, vector<16x128xf32>
      %c0_14 = arith.constant 0 : index
      %c0_15 = arith.constant 0 : index
      %23 = vector.load %arg4[%c0_14, %c0_15] : memref<16x128xf32, #tpu.memory_space<vmem>>, vector<16x128xf32>
      tpu.vector_store %arg4[%c0_14, %c0_15], %22 {strides = array<i32>} : memref<16x128xf32, #tpu.memory_space<vmem>>, vector<16x128xf32>,
    } else {
    }
    return
  }
  func.func @transform_0(%arg0: i32, %arg1: i32) -> (i32, i32) {
    %c1_i32 = arith.constant 1 : i32
    %0 = arith.muli %arg0, %c1_i32 : i32
    %1 = arith.addi %0, %arg1 : i32
    %c0_i32 = arith.constant 0 : i32
    %2 = arith.minsi %1, %c0_i32 : i32
    %c0_i32_0 = arith.constant 0 : i32
    %c0_i32_1 = arith.constant 0 : i32
    return %2, %c0_i32_0 : i32, i32
  }
  func.func @transform_1(%arg0: i32, %arg1: i32) -> (i32, i32) {
    %c1_i32 = arith.constant 1 : i32
    %0 = arith.muli %arg0, %c1_i32 : i32
    %1 = arith.addi %0, %arg1 : i32
    %c0_i32 = arith.constant 0 : i32
    %2 = arith.minsi %1, %c0_i32 : i32
    %c0_i32_0 = arith.constant 0 : i32
    %c0_i32_1 = arith.constant 0 : i32
    return %2, %c0_i32_0 : i32, i32
  }
  func.func @transform_2(%arg0: i32, %arg1: i32) -> (i32, i32) {
    %c0_i32 = arith.constant 0 : i32
    %c0_i32_0 = arith.constant 0 : i32
    return %arg0, %c0_i32 : i32, i32
  }
}

</mosaic_0001>

<bundles_post_ra>
// kernel: tpu_custom_call.1
= control target key start
LH: loop header
LB: loop body
LE: loop exit
PB: predicated region body
PF: predicated region fallthrough
CT: control target
= control target key end

     0   :  { %7 = vsyncpa [#allocation4], 0  ;;  %s291_s0 = inlined_call_operand.hbm [shape: f32[16,128], index: 0, kind: input, shape index: {}]   ;;  %s292_s1 = inlined_call_operand.hbm [shape: f32[16,128], index: 1, kind: input, shape index: {}]   ;;  %s293_s2 = inlined_call_operand.hbm [shape: f32[16,128], index: 2, kind: output, shape index: {}]  }
   0x1   :  { %8 = vsyncpa [#allocation7], 0 }
   0x2   :  { %9 = vsyncpa [#allocation5], 0  ;;  %s226_s9 = smov [#allocation3]   ;;  %s154_s13 = scalar_lea.hbm %s291_s0, 256 }
   0x3   :  { %s21_s10 = sshll.u32 %s226_s9, 4  ;;  %p155_p0 = scmp.ne.s32.totalorder %s291_s0, %s154_s13  ;;  %s22_s10 = int_to_ptr.vmem [resolvable:$true] %s21_s10 }
   0x4   :  { %p158_p1 = scmp.lt.u32.totalorder %s154_s13, %s291_s0 }
   0x6   :  { %p160_p2 = pnand %p158_p1, %p155_p0 }
   0x8   :  { %163 = shalt.err (!%p160_p2)
}
   0x9   :  { %s164_s18 = scalar_lea.vmem %s22_s10, 256  ;;  %p169_p4 = scmp.lt.s32.totalorder %s22_s10, %s22_s10 }
   0xa   :  { %p165_p3 = scmp.ne.s32.totalorder %s22_s10, %s164_s18  ;;  %p170_p5 = scmp.lt.s32.totalorder %s164_s18, %s164_s18 }
   0xc   :  { %p171_p6 = por %p170_p5, %p169_p4 }
   0xe   :  { %p172_p7 = pnand %p171_p6, %p165_p3 }
  0x10   :  { %175 = shalt.err (!%p172_p7)
}
  0x11   :  { %s227_s19 = smov 128   ;;  %s228_s20 = smov 8  }
  0x12   :  { %27 = dma.hbm_to_vmem [thread:$0]  %s291_s0, 256, %s22_s10, [#allocation4], %s227_s19, %s227_s19, %s228_s20  }
  0x13   :  { %s229_s23 = smov [#allocation6]   ;;  %s176_s27 = scalar_lea.hbm %s292_s1, 256 }
  0x14   :  { %s39_s24 = sshll.u32 %s229_s23, 4  ;;  %p177_p8 = scmp.ne.s32.totalorder %s292_s1, %s176_s27  ;;  %s40_s24 = int_to_ptr.vmem [resolvable:$true] %s39_s24 }
  0x15   :  { %p180_p9 = scmp.lt.u32.totalorder %s176_s27, %s292_s1 }
  0x17   :  { %p182_p10 = pnand %p180_p9, %p177_p8 }
  0x19   :  { %185 = shalt.err (!%p182_p10)
}
  0x1a   :  { %s186_s4 = scalar_lea.vmem %s40_s24, 256  ;;  %p191_p12 = scmp.lt.s32.totalorder %s40_s24, %s40_s24 }
  0x1b   :  { %p187_p11 = scmp.ne.s32.totalorder %s40_s24, %s186_s4  ;;  %p192_p13 = scmp.lt.s32.totalorder %s186_s4, %s186_s4 }
  0x1d   :  { %p193_p0 = por %p192_p13, %p191_p12 }
  0x1f   :  { %p194_p1 = pnand %p193_p0, %p187_p11 }
  0x21   :  { %197 = shalt.err (!%p194_p1)
}
  0x22   :  { %45 = dma.hbm_to_vmem [thread:$0]  %s292_s1, 256, %s40_s24, [#allocation7], %s227_s19, %s227_s19, %s228_s20  }
  0x23   :  { %220 = dma.done.wait [#allocation4], 256  }
  0x24   :  { %221 = vsyncadd [#allocation4], 4294967040 }
  0x25   :  { %222 = dma.done.wait [#allocation7], 256  }
  0x26   :  { %223 = vsyncadd [#allocation7], 4294967040  ;;  %v66_v0 = vld [vmem:[#allocation3] sm:$0xff]  ;;  %v68_v1 = vld [vmem:[#allocation6] sm:$0xff]  ;;  %s230_s1 = smov [#allocation8]  }
  0x27   :  { %v67_v2 = vld [vmem:[#allocation3 + $0x8] sm:$0xff]  ;;  %v70_v3 = vsub.f32 %v66_v0, %v68_v1  ;;  %v69_v4 = vld [vmem:[#allocation6 + $0x8] sm:$0xff]  ;;  %s122_s6 = sshll.u32 %s230_s1, 4  ;;  %s123_s6 = int_to_ptr.vmem [resolvable:$true] %s122_s6 }
  0x28   :  { %v71_v5 = vsub.f32 %v67_v2, %v69_v4  ;;  %s198_s7 = scalar_lea.vmem %s123_s6, 256  ;;  %p203_p3 = scmp.lt.s32.totalorder %s123_s6, %s123_s6 }
  0x29   :  { %v72_v6 = vand.u32 2147483647, %v70_v3  ;;  %p199_p2 = scmp.ne.s32.totalorder %s123_s6, %s198_s7  ;;  %p204_p4 = scmp.lt.s32.totalorder %s198_s7, %s198_s7 }
  0x2a   :  { %v73_v7 = vand.u32 2147483647, %v71_v5 }
  0x2b   :  { %v74_v8 = vmul.f32 -2.0, %v72_v6  ;;  %p205_p5 = por %p204_p4, %p203_p3 }
  0x2c   :  { %v75_v9 = vmul.f32 -2.0, %v73_v7 }
  0x2d   :  { %v76_v10 = vmul.f32 1.442695, %v74_v8  ;;  %p206_p6 = pnand %p205_p5, %p199_p2 }
  0x2e   :  { %v78_v11 = vmul.f32 1.442695, %v75_v9 }
  0x2f   :  { %146 = vpow2.f32 %v76_v10 }
  0x30   :  { %148 = vpow2.f32 %v78_v11 }
  0x39   :  { %v147_v12 = vpop.eup %146 }
  0x3a   :  { %v149_v13 = vpop.eup %148  ;;  %v80_v14 = vadd.f32 1.0, %v147_v12  ;;  %v83_v16 = vmul.f32 -0.5, %v147_v12  ;;  %v86_v19 = vand.u32 2147483647, %v147_v12 }
  0x3b   :  { %v89_v15 = vadd.f32 1.0, %v149_v13  ;;  %v92_v17 = vmul.f32 -0.5, %v149_v13  ;;  %v95_v21 = vand.u32 2147483647, %v149_v13 }
  0x3c   :  { %150 = vlog2.f32 %v80_v14  ;;  %v84_v18 = vadd.f32 1.0, %v83_v16  ;;  %vm87_vm0 = vcmp.lt.f32.partialorder %v86_v19, 0.0004427343 }
  0x3d   :  { %152 = vlog2.f32 %v89_v15  ;;  %v93_v20 = vadd.f32 1.0, %v92_v17  ;;  %vm96_vm1 = vcmp.lt.f32.partialorder %v95_v21, 0.0004427343 }
  0x3e   :  { %v85_v22 = vmul.f32 %v147_v12, %v84_v18 }
  0x3f   :  { %v94_v24 = vmul.f32 %v149_v13, %v93_v20 }
  0x46   :  { %v151_v23 = vpop.eup %150 }
  0x47   :  { %v153_v25 = vpop.eup %152  ;;  %v82_v26 = vmul.f32 0.6931472, %v151_v23 }
  0x48   :  { %v91_v27 = vmul.f32 0.6931472, %v153_v25 }
  0x49   :  { %v88_v28 = vsel %vm87_vm0, %v85_v22, %v82_v26 }
  0x4a   :  { %v98_v29 = vadd.f32 %v88_v28, %v72_v6  ;;  %v97_v30 = vsel %vm96_vm1, %v94_v24, %v91_v27 }
  0x4b   :  { %v99_v31 = vadd.f32 %v97_v30, %v73_v7 }
  0x4c   :  { %v139_v32 = vadd.f32 -0.6931472, %v98_v29 }
  0x4d   :  { %v140_v33 = vadd.f32 -0.6931472, %v99_v31 }
  0x4e   :  { %115 = vst [vmem:[#allocation8] sm:$0xff] %v139_v32 }
  0x4f   :  { %116 = vst [vmem:[#allocation8 + $0x8] sm:$0xff] %v140_v33 }
  0x50   :  { %209 = shalt.err (!%p206_p6)
}
  0x51   :  { %s210_s10 = scalar_lea.hbm %s293_s2, 256 }
  0x52   :  { %p211_p7 = scmp.ne.s32.totalorder %s293_s2, %s210_s10  ;;  %p214_p8 = scmp.lt.u32.totalorder %s210_s10, %s293_s2 }
  0x54   :  { %p216_p9 = pnand %p214_p8, %p211_p7 }
  0x56   :  { %219 = shalt.err (!%p216_p9)
}
  0x57   :  { %128 = dma.vmem_to_hbm [thread:$0]  %s123_s6, 256, %s293_s2, [#allocation5], %s227_s19, %s227_s19, %s228_s20  }
  0x58   :  { %224 = dma.done.wait [#allocation5], 256  }
  0x59   :  { %225 = vsyncadd [#allocation5], 4294967040 }
  0x5a   :  { %132 = vsyncpa [#allocation4], 1 }
  0x5b   :  { %133 = vsyncpa [#allocation7], 1 }
  0x5c   :  { %134 = vsyncpa [#allocation5], 1 }

</bundles_post_ra>
